<compile_context>
chip_gen: v6e
topology: v6e:2x2x1
jax: 0.10.0
libtpu: 0.0.40
codegen_flags: <defaults>
</compile_context>

<pallas_src>
import functools

import jax
import jax.numpy as jnp
from jax.experimental import pallas as pl
from jax.experimental.pallas import tpu as pltpu


def _head_kernel(x_ref, mask_ref, w3_ref, bnb_ref, w1_ref, b1_ref, out_ref,
                 *, H, W, nb, Cin):
    # x_ref:    (nb, Cin, H*W)     images, channels on sublanes, pixels on lanes
    # mask_ref: (9, H*W)           0/1 boundary masks, one row per 3x3 tap
    # w3_ref:   (9, Cmid, Cin)     3x3 conv weights (BN scale folded), per-tap
    # bnb_ref:  (Cmid, 1)          folded BN bias
    # w1_ref:   (classes, Cmid)    1x1 conv weights
    # b1_ref:   (classes, 1)       1x1 conv bias
    # out_ref:  (nb, classes, H*W) lane-dense output
    HW = H * W

    # Hoisted dense loads (shared across all images in this block).
    masks = mask_ref[...]                       # (9, HW)  one dense load
    w_all = w3_ref[...]                         # (9, Cmid, Cin)
    bnb = bnb_ref[...]                          # (Cmid, 1)
    w1 = w1_ref[...]                            # (classes, Cmid)
    b1 = b1_ref[...]                            # (classes, 1)

    # Per-tap weight / mask values, extracted once (not per image).
    w_taps = [w_all[t] for t in range(9)]                       # (Cmid, Cin)
    mask_rows = [masks[t:t + 1, :] for t in range(9)]           # (1, HW)

    for b in range(nb):                         # static unroll over images
        x = x_ref[b]                            # (Cin, HW)

        # 3x3 conv (+ folded BN scale): accumulate 9 per-tap matmuls entirely
        # in registers.  Each tap is a lane-roll (XLU, nearly free) of the
        # flattened image, with out-of-image pixels masked to zero (VPU).
        acc = None
        for kh in range(3):
            for kw in range(3):
                t = kh * 3 + kw
                delta = (kh - 1) * W + (kw - 1)          # flat offset of tap
                shift = (-delta) % HW
                rolled = x if shift == 0 else pltpu.roll(x, shift, axis=1)
                if t == 4:                               # center tap: mask == 1
                    tap = rolled
                else:
                    tap = rolled * mask_rows[t]          # (Cin, HW)
                p = jnp.dot(w_taps[t], tap,
                            preferred_element_type=jnp.float32)  # (Cmid, HW)
                acc = p if acc is None else acc + p

        # Folded BN bias + ReLU.
        h = jnp.maximum(acc + bnb, 0.0)

        # Dropout2d is identity at inference time.
        # TODO(synk): training-mode per-channel Dropout2d mask not implemented.

        # 1x1 conv + bias, transposed so the store is lane-dense (classes, HW).
        y = jnp.dot(w1, h, preferred_element_type=jnp.float32) + b1
        out_ref[b] = y.astype(out_ref.dtype)


def _pick_images_per_step(N, max_nb=8):
    """Largest divisor of N (capped) that keeps >= 2 grid steps when N >= 2,
    so v7x's second TensorCore is never idled."""
    best = 1
    for nb in range(1, min(max_nb, N) + 1):
        if N % nb == 0 and (N // nb >= 2 or N == 1):
            best = nb
    return best


def head_forward(x_nchw, w3_oihw, gamma, beta, run_mean, run_var, eps,
                 w1_oihw, b1):
    """Inference forward of Head.  x_nchw: (N, Cin, H, W) -> (N, classes, H, W)."""
    N, Cin, H, W = x_nchw.shape
    Cmid = w3_oihw.shape[0]
    classes = w1_oihw.shape[0]
    HW = H * W

    # Fold BatchNorm (inference) into the conv: scale into weights, keep bias.
    scale = gamma / jnp.sqrt(run_var + eps)
    bn_bias = (beta - run_mean * scale).reshape(Cmid, 1)
    w3_scaled = w3_oihw * scale[:, None, None, None]          # (Cmid, Cin, 3, 3)

    # Per-tap weight layout: (9, Cmid, Cin), taps ordered (kh, kw). No padding.
    w_taps = jnp.transpose(w3_scaled, (2, 3, 0, 1)).reshape(9, Cmid, Cin)

    w1t = w1_oihw[:, :, 0, 0]                                  # (classes, Cmid)
    b1c = b1.reshape(classes, 1)

    # Per-tap boundary masks (tiny constants, computed once at trace time).
    ii = jnp.arange(HW, dtype=jnp.int32) // W
    jj = jnp.arange(HW, dtype=jnp.int32) % W
    masks = []
    for kh in range(3):
        for kw in range(3):
            di, dj = kh - 1, kw - 1
            ok = ((ii + di >= 0) & (ii + di < H) &
                  (jj + dj >= 0) & (jj + dj < W))
            masks.append(ok.astype(x_nchw.dtype))
    masks = jnp.stack(masks, axis=0)                           # (9, HW)

    # NCHW -> (N, Cin, H*W): metadata-only reshape, no HBM transpose/pad pass.
    x_flat = x_nchw.reshape(N, Cin, HW)

    nb = _pick_images_per_step(N)
    grid = (N // nb,)

    kernel = functools.partial(_head_kernel, H=H, W=W, nb=nb, Cin=Cin)

    out_flat = pl.pallas_call(
        kernel,
        out_shape=jax.ShapeDtypeStruct((N, classes, HW), x_nchw.dtype),
        grid_spec=pltpu.PrefetchScalarGridSpec(
            num_scalar_prefetch=0,
            grid=grid,
            in_specs=[
                pl.BlockSpec((nb, Cin, HW), lambda n: (n, 0, 0)),
                pl.BlockSpec((9, HW), lambda n: (0, 0)),
                pl.BlockSpec((9, Cmid, Cin), lambda n: (0, 0, 0)),
                pl.BlockSpec((Cmid, 1), lambda n: (0, 0)),
                pl.BlockSpec((classes, Cmid), lambda n: (0, 0)),
                pl.BlockSpec((classes, 1), lambda n: (0, 0)),
            ],
            out_specs=pl.BlockSpec((nb, classes, HW), lambda n: (n, 0, 0)),
        ),
        compiler_params=pltpu.CompilerParams(
            dimension_semantics=("parallel",),
            vmem_limit_bytes=32 * 1024 * 1024,
        ),
    )(x_flat, masks, w_taps, bn_bias, w1t, b1c)

    # (N, classes, H*W) -> NCHW: free reshape, no transpose needed.
    return out_flat.reshape(N, classes, H, W)


def head_reference(x_nchw, w3_oihw, gamma, beta, run_mean, run_var, eps,
                   w1_oihw, b1):
    """Pure-JAX reference (XLA convs) for correctness checking."""
    h = jax.lax.conv_general_dilated(
        x_nchw, w3_oihw, window_strides=(1, 1), padding=((1, 1), (1, 1)),
        dimension_numbers=("NCHW", "OIHW", "NCHW"))
    scale = gamma / jnp.sqrt(run_var + eps)
    bias = beta - run_mean * scale
    h = h * scale[None, :, None, None] + bias[None, :, None, None]
    h = jnp.maximum(h, 0.0)
    y = jax.lax.conv_general_dilated(
        h, w1_oihw, window_strides=(1, 1), padding=((0, 0), (0, 0)),
        dimension_numbers=("NCHW", "OIHW", "NCHW"))
    return y + b1[None, :, None, None]


if __name__ == "__main__":
    # Small, module-consistent shapes.
    N, Cin, H, W = 2, 4, 16, 16
    Cmid, classes = 8, 3
    eps = 1e-5

    key = jax.random.PRNGKey(0)
    k_x, k_w3, k_g, k_b, k_m, k_v, k_w1, k_b1 = jax.random.split(key, 8)

    x = jax.random.normal(k_x, (N, Cin, H, W), dtype=jnp.float32)

    # Deterministic synthetic parameters (shapes from Head.__init__).
    w3 = jax.random.normal(k_w3, (Cmid, Cin, 3, 3), dtype=jnp.float32) * 0.1
    gamma = 1.0 + 0.1 * jax.random.normal(k_g, (Cmid,), dtype=jnp.float32)
    beta = 0.1 * jax.random.normal(k_b, (Cmid,), dtype=jnp.float32)
    run_mean = 0.05 * jax.random.normal(k_m, (Cmid,), dtype=jnp.float32)
    run_var = 1.0 + 0.1 * jax.nn.softplus(
        jax.random.normal(k_v, (Cmid,), dtype=jnp.float32))
    w1 = jax.random.normal(k_w1, (classes, Cmid, 1, 1), dtype=jnp.float32) * 0.1
    b1 = 0.1 * jax.random.normal(k_b1, (classes,), dtype=jnp.float32)

    out = head_forward(x, w3, gamma, beta, run_mean, run_var, eps, w1, b1)
    out = jax.block_until_ready(out)

    ref = head_reference(x, w3, gamma, beta, run_mean, run_var, eps, w1, b1)
    ref = jax.block_until_ready(ref)

    assert out.shape == (N, classes, H, W), out.shape
    assert jnp.allclose(out, ref, atol=1e-4, rtol=1e-4), (
        float(jnp.max(jnp.abs(out - ref))))
    print("KERNEL_OK")
</pallas_src>

<mosaic_0001>
module attributes {stable_mosaic.version = 11 : i64} {
  func.func @_head_kernel(%arg0: i32, %arg1: memref<1x4x256xf32, #tpu.memory_space<vmem>>, %arg2: memref<9x256xf32, #tpu.memory_space<vmem>>, %arg3: memref<9x8x4xf32, #tpu.memory_space<vmem>>, %arg4: memref<8x1xf32, #tpu.memory_space<vmem>>, %arg5: memref<3x8xf32, #tpu.memory_space<vmem>>, %arg6: memref<3x1xf32, #tpu.memory_space<vmem>>, %arg7: memref<1x3x256xf32, #tpu.memory_space<vmem>>) attributes {dimension_semantics = [#tpu.dimension_semantics<parallel>], iteration_bounds = array<i64: 2>, scalar_prefetch = 0 : i64, scratch_operands = 0 : i64, tpu.core_type = #tpu.core_type<tc>, window_params = [{transform_indices = @transform_0, window_bounds = array<i64: 1, 4, 256>}, {pipeline_mode = #tpu.pipeline_mode<synchronous>, transform_indices = @transform_1, window_bounds = array<i64: 9, 256>}, {pipeline_mode = #tpu.pipeline_mode<synchronous>, transform_indices = @transform_2, window_bounds = array<i64: 9, 8, 4>}, {pipeline_mode = #tpu.pipeline_mode<synchronous>, transform_indices = @transform_3, window_bounds = array<i64: 8, 1>}, {pipeline_mode = #tpu.pipeline_mode<synchronous>, transform_indices = @transform_4, window_bounds = array<i64: 3, 8>}, {pipeline_mode = #tpu.pipeline_mode<synchronous>, transform_indices = @transform_5, window_bounds = array<i64: 3, 1>}, {transform_indices = @transform_6, window_bounds = array<i64: 1, 3, 256>}]} {
    %c0 = arith.constant 0 : index
    %c0_0 = arith.constant 0 : index
    %0 = vector.load %arg2[%c0, %c0_0] : memref<9x256xf32, #tpu.memory_space<vmem>>, vector<9x256xf32>
    %c0_1 = arith.constant 0 : index
    %c0_2 = arith.constant 0 : index
    %c0_3 = arith.constant 0 : index
    %1 = vector.load %arg3[%c0_1, %c0_2, %c0_3] : memref<9x8x4xf32, #tpu.memory_space<vmem>>, vector<9x8x4xf32>
    %c0_4 = arith.constant 0 : index
    %c0_5 = arith.constant 0 : index
    %2 = vector.load %arg4[%c0_4, %c0_5] : memref<8x1xf32, #tpu.memory_space<vmem>>, vector<8x1xf32>
    %c0_6 = arith.constant 0 : index
    %c0_7 = arith.constant 0 : index
    %3 = vector.load %arg5[%c0_6, %c0_7] : memref<3x8xf32, #tpu.memory_space<vmem>>, vector<3x8xf32>
    %c0_8 = arith.constant 0 : index
    %c0_9 = arith.constant 0 : index
    %4 = vector.load %arg6[%c0_8, %c0_9] : memref<3x1xf32, #tpu.memory_space<vmem>>, vector<3x1xf32>
    %5 = vector.extract_strided_slice %1 {offsets = [0, 0, 0], sizes = [1, 8, 4], strides = [1, 1, 1]} : vector<9x8x4xf32> to vector<1x8x4xf32>
    %6 = vector.shape_cast %5 : vector<1x8x4xf32> to vector<8x4xf32>
    %7 = vector.extract_strided_slice %1 {offsets = [1, 0, 0], sizes = [1, 8, 4], strides = [1, 1, 1]} : vector<9x8x4xf32> to vector<1x8x4xf32>
    %8 = vector.shape_cast %7 : vector<1x8x4xf32> to vector<8x4xf32>
    %9 = vector.extract_strided_slice %1 {offsets = [2, 0, 0], sizes = [1, 8, 4], strides = [1, 1, 1]} : vector<9x8x4xf32> to vector<1x8x4xf32>
    %10 = vector.shape_cast %9 : vector<1x8x4xf32> to vector<8x4xf32>
    %11 = vector.extract_strided_slice %1 {offsets = [3, 0, 0], sizes = [1, 8, 4], strides = [1, 1, 1]} : vector<9x8x4xf32> to vector<1x8x4xf32>
    %12 = vector.shape_cast %11 : vector<1x8x4xf32> to vector<8x4xf32>
    %13 = vector.extract_strided_slice %1 {offsets = [4, 0, 0], sizes = [1, 8, 4], strides = [1, 1, 1]} : vector<9x8x4xf32> to vector<1x8x4xf32>
    %14 = vector.shape_cast %13 : vector<1x8x4xf32> to vector<8x4xf32>
    %15 = vector.extract_strided_slice %1 {offsets = [5, 0, 0], sizes = [1, 8, 4], strides = [1, 1, 1]} : vector<9x8x4xf32> to vector<1x8x4xf32>
    %16 = vector.shape_cast %15 : vector<1x8x4xf32> to vector<8x4xf32>
    %17 = vector.extract_strided_slice %1 {offsets = [6, 0, 0], sizes = [1, 8, 4], strides = [1, 1, 1]} : vector<9x8x4xf32> to vector<1x8x4xf32>
    %18 = vector.shape_cast %17 : vector<1x8x4xf32> to vector<8x4xf32>
    %19 = vector.extract_strided_slice %1 {offsets = [7, 0, 0], sizes = [1, 8, 4], strides = [1, 1, 1]} : vector<9x8x4xf32> to vector<1x8x4xf32>
    %20 = vector.shape_cast %19 : vector<1x8x4xf32> to vector<8x4xf32>
    %21 = vector.extract_strided_slice %1 {offsets = [8, 0, 0], sizes = [1, 8, 4], strides = [1, 1, 1]} : vector<9x8x4xf32> to vector<1x8x4xf32>
    %22 = vector.shape_cast %21 : vector<1x8x4xf32> to vector<8x4xf32>
    %23 = vector.extract_strided_slice %0 {offsets = [0, 0], sizes = [1, 256], strides = [1, 1]} : vector<9x256xf32> to vector<1x256xf32>
    %24 = vector.extract_strided_slice %0 {offsets = [1, 0], sizes = [1, 256], strides = [1, 1]} : vector<9x256xf32> to vector<1x256xf32>
    %25 = vector.extract_strided_slice %0 {offsets = [2, 0], sizes = [1, 256], strides = [1, 1]} : vector<9x256xf32> to vector<1x256xf32>
    %26 = vector.extract_strided_slice %0 {offsets = [3, 0], sizes = [1, 256], strides = [1, 1]} : vector<9x256xf32> to vector<1x256xf32>
    %27 = vector.extract_strided_slice %0 {offsets = [5, 0], sizes = [1, 256], strides = [1, 1]} : vector<9x256xf32> to vector<1x256xf32>
    %28 = vector.extract_strided_slice %0 {offsets = [6, 0], sizes = [1, 256], strides = [1, 1]} : vector<9x256xf32> to vector<1x256xf32>
    %29 = vector.extract_strided_slice %0 {offsets = [7, 0], sizes = [1, 256], strides = [1, 1]} : vector<9x256xf32> to vector<1x256xf32>
    %30 = vector.extract_strided_slice %0 {offsets = [8, 0], sizes = [1, 256], strides = [1, 1]} : vector<9x256xf32> to vector<1x256xf32>
    %c0_10 = arith.constant 0 : index
    %c0_11 = arith.constant 0 : index
    %c0_12 = arith.constant 0 : index
    %31 = vector.load %arg1[%c0_10, %c0_11, %c0_12] : memref<1x4x256xf32, #tpu.memory_space<vmem>>, vector<1x4x256xf32>
    %32 = vector.shape_cast %31 : vector<1x4x256xf32> to vector<4x256xf32>
    %c17_i32 = arith.constant 17 : i32
    %33 = tpu.dynamic_rotate %32 by %c17_i32 dim 1 : vector<4x256xf32>, i32 -> vector<4x256xf32>
    %34 = vector.broadcast %23 : vector<1x256xf32> to vector<4x256xf32>
    %35 = arith.mulf %33, %34 : vector<4x256xf32>
    %cst = arith.constant dense<0.000000e+00> : vector<8x256xf32>
    %36 = tpu.matmul %6, %35, %cst {dimension_numbers = #tpu.dot_dimension_numbers<[1], [0], [0], [1], [0, 0, 1, 1], [], []>} : vector<8x4xf32>, vector<4x256xf32>, vector<8x256xf32> -> vector<8x256xf32>
    %c16_i32 = arith.constant 16 : i32
    %37 = tpu.dynamic_rotate %32 by %c16_i32 dim 1 : vector<4x256xf32>, i32 -> vector<4x256xf32>
    %38 = vector.broadcast %24 : vector<1x256xf32> to vector<4x256xf32>
    %39 = arith.mulf %37, %38 : vector<4x256xf32>
    %cst_13 = arith.constant dense<0.000000e+00> : vector<8x256xf32>
    %40 = tpu.matmul %8, %39, %cst_13 {dimension_numbers = #tpu.dot_dimension_numbers<[1], [0], [0], [1], [0, 0, 1, 1], [], []>} : vector<8x4xf32>, vector<4x256xf32>, vector<8x256xf32> -> vector<8x256xf32>
    %41 = arith.addf %36, %40 : vector<8x256xf32>
    %c15_i32 = arith.constant 15 : i32
    %42 = tpu.dynamic_rotate %32 by %c15_i32 dim 1 : vector<4x256xf32>, i32 -> vector<4x256xf32>
    %43 = vector.broadcast %25 : vector<1x256xf32> to vector<4x256xf32>
    %44 = arith.mulf %42, %43 : vector<4x256xf32>
    %cst_14 = arith.constant dense<0.000000e+00> : vector<8x256xf32>
    %45 = tpu.matmul %10, %44, %cst_14 {dimension_numbers = #tpu.dot_dimension_numbers<[1], [0], [0], [1], [0, 0, 1, 1], [], []>} : vector<8x4xf32>, vector<4x256xf32>, vector<8x256xf32> -> vector<8x256xf32>
    %46 = arith.addf %41, %45 : vector<8x256xf32>
    %c1_i32 = arith.constant 1 : i32
    %47 = tpu.dynamic_rotate %32 by %c1_i32 dim 1 : vector<4x256xf32>, i32 -> vector<4x256xf32>
    %48 = vector.broadcast %26 : vector<1x256xf32> to vector<4x256xf32>
    %49 = arith.mulf %47, %48 : vector<4x256xf32>
    %cst_15 = arith.constant dense<0.000000e+00> : vector<8x256xf32>
    %50 = tpu.matmul %12, %49, %cst_15 {dimension_numbers = #tpu.dot_dimension_numbers<[1], [0], [0], [1], [0, 0, 1, 1], [], []>} : vector<8x4xf32>, vector<4x256xf32>, vector<8x256xf32> -> vector<8x256xf32>
    %51 = arith.addf %46, %50 : vector<8x256xf32>
    %cst_16 = arith.constant dense<0.000000e+00> : vector<8x256xf32>
    %52 = tpu.matmul %14, %32, %cst_16 {dimension_numbers = #tpu.dot_dimension_numbers<[1], [0], [0], [1], [0, 0, 1, 1], [], []>} : vector<8x4xf32>, vector<4x256xf32>, vector<8x256xf32> -> vector<8x256xf32>
    %53 = arith.addf %51, %52 : vector<8x256xf32>
    %c255_i32 = arith.constant 255 : i32
    %54 = tpu.dynamic_rotate %32 by %c255_i32 dim 1 : vector<4x256xf32>, i32 -> vector<4x256xf32>
    %55 = vector.broadcast %27 : vector<1x256xf32> to vector<4x256xf32>
    %56 = arith.mulf %54, %55 : vector<4x256xf32>
    %cst_17 = arith.constant dense<0.000000e+00> : vector<8x256xf32>
    %57 = tpu.matmul %16, %56, %cst_17 {dimension_numbers = #tpu.dot_dimension_numbers<[1], [0], [0], [1], [0, 0, 1, 1], [], []>} : vector<8x4xf32>, vector<4x256xf32>, vector<8x256xf32> -> vector<8x256xf32>
    %58 = arith.addf %53, %57 : vector<8x256xf32>
    %c241_i32 = arith.constant 241 : i32
    %59 = tpu.dynamic_rotate %32 by %c241_i32 dim 1 : vector<4x256xf32>, i32 -> vector<4x256xf32>
    %60 = vector.broadcast %28 : vector<1x256xf32> to vector<4x256xf32>
    %61 = arith.mulf %59, %60 : vector<4x256xf32>
    %cst_18 = arith.constant dense<0.000000e+00> : vector<8x256xf32>
    %62 = tpu.matmul %18, %61, %cst_18 {dimension_numbers = #tpu.dot_dimension_numbers<[1], [0], [0], [1], [0, 0, 1, 1], [], []>} : vector<8x4xf32>, vector<4x256xf32>, vector<8x256xf32> -> vector<8x256xf32>
    %63 = arith.addf %58, %62 : vector<8x256xf32>
    %c240_i32 = arith.constant 240 : i32
    %64 = tpu.dynamic_rotate %32 by %c240_i32 dim 1 : vector<4x256xf32>, i32 -> vector<4x256xf32>
    %65 = vector.broadcast %29 : vector<1x256xf32> to vector<4x256xf32>
    %66 = arith.mulf %64, %65 : vector<4x256xf32>
    %cst_19 = arith.constant dense<0.000000e+00> : vector<8x256xf32>
    %67 = tpu.matmul %20, %66, %cst_19 {dimension_numbers = #tpu.dot_dimension_numbers<[1], [0], [0], [1], [0, 0, 1, 1], [], []>} : vector<8x4xf32>, vector<4x256xf32>, vector<8x256xf32> -> vector<8x256xf32>
    %68 = arith.addf %63, %67 : vector<8x256xf32>
    %c239_i32 = arith.constant 239 : i32
    %69 = tpu.dynamic_rotate %32 by %c239_i32 dim 1 : vector<4x256xf32>, i32 -> vector<4x256xf32>
    %70 = vector.broadcast %30 : vector<1x256xf32> to vector<4x256xf32>
    %71 = arith.mulf %69, %70 : vector<4x256xf32>
    %cst_20 = arith.constant dense<0.000000e+00> : vector<8x256xf32>
    %72 = tpu.matmul %22, %71, %cst_20 {dimension_numbers = #tpu.dot_dimension_numbers<[1], [0], [0], [1], [0, 0, 1, 1], [], []>} : vector<8x4xf32>, vector<4x256xf32>, vector<8x256xf32> -> vector<8x256xf32>
    %73 = arith.addf %68, %72 : vector<8x256xf32>
    %74 = vector.broadcast %2 : vector<8x1xf32> to vector<8x256xf32>
    %75 = arith.addf %73, %74 : vector<8x256xf32>
    %cst_21 = arith.constant 0.000000e+00 : f32
    %76 = vector.broadcast %cst_21 : f32 to vector<8x256xf32>
    %77 = arith.maximumf %75, %76 : vector<8x256xf32>
    %cst_22 = arith.constant dense<0.000000e+00> : vector<3x256xf32>
    %78 = tpu.matmul %3, %77, %cst_22 {dimension_numbers = #tpu.dot_dimension_numbers<[1], [0], [0], [1], [0, 0, 1, 1], [], []>} : vector<3x8xf32>, vector<8x256xf32>, vector<3x256xf32> -> vector<3x256xf32>
    %79 = vector.broadcast %4 : vector<3x1xf32> to vector<3x256xf32>
    %80 = arith.addf %78, %79 : vector<3x256xf32>
    %c0_23 = arith.constant 0 : index
    %c0_24 = arith.constant 0 : index
    %c0_25 = arith.constant 0 : index
    %81 = vector.load %arg7[%c0_23, %c0_24, %c0_25] : memref<1x3x256xf32, #tpu.memory_space<vmem>>, vector<1x3x256xf32>
    %82 = vector.shape_cast %81 : vector<1x3x256xf32> to vector<3x256xf32>
    %83 = vector.shape_cast %80 : vector<3x256xf32> to vector<1x3x256xf32>
    tpu.vector_store %arg7[%c0_23, %c0_24, %c0_25], %83 {strides = array<i32>} : memref<1x3x256xf32, #tpu.memory_space<vmem>>, vector<1x3x256xf32>,
    return
  }
  func.func @transform_0(%arg0: i32) -> (i32, i32, i32) {
    %c0_i32 = arith.constant 0 : i32
    %c0_i32_0 = arith.constant 0 : i32
    %c0_i32_1 = arith.constant 0 : i32
    return %arg0, %c0_i32, %c0_i32_0 : i32, i32, i32
  }
  func.func @transform_1(%arg0: i32) -> (i32, i32) {
    %c0_i32 = arith.constant 0 : i32
    %c0_i32_0 = arith.constant 0 : i32
    %c0_i32_1 = arith.constant 0 : i32
    return %c0_i32, %c0_i32_0 : i32, i32
  }
  func.func @transform_2(%arg0: i32) -> (i32, i32, i32) {
    %c0_i32 = arith.constant 0 : i32
    %c0_i32_0 = arith.constant 0 : i32
    %c0_i32_1 = arith.constant 0 : i32
    %c0_i32_2 = arith.constant 0 : i32
    return %c0_i32, %c0_i32_0, %c0_i32_1 : i32, i32, i32
  }
  func.func @transform_3(%arg0: i32) -> (i32, i32) {
    %c0_i32 = arith.constant 0 : i32
    %c0_i32_0 = arith.constant 0 : i32
    %c0_i32_1 = arith.constant 0 : i32
    return %c0_i32, %c0_i32_0 : i32, i32
  }
  func.func @transform_4(%arg0: i32) -> (i32, i32) {
    %c0_i32 = arith.constant 0 : i32
    %c0_i32_0 = arith.constant 0 : i32
    %c0_i32_1 = arith.constant 0 : i32
    return %c0_i32, %c0_i32_0 : i32, i32
  }
  func.func @transform_5(%arg0: i32) -> (i32, i32) {
    %c0_i32 = arith.constant 0 : i32
    %c0_i32_0 = arith.constant 0 : i32
    %c0_i32_1 = arith.constant 0 : i32
    return %c0_i32, %c0_i32_0 : i32, i32
  }
  func.func @transform_6(%arg0: i32) -> (i32, i32, i32) {
    %c0_i32 = arith.constant 0 : i32
    %c0_i32_0 = arith.constant 0 : i32
    %c0_i32_1 = arith.constant 0 : i32
    return %arg0, %c0_i32, %c0_i32_0 : i32, i32, i32
  }
}

</mosaic_0001>

<bundles_post_ra>
// kernel: tpu_custom_call.1
= control target key start
LH: loop header
LB: loop body
LE: loop exit
PB: predicated region body
PF: predicated region fallthrough
CT: control target
= control target key end

     0   :  { %s1410_s21 = smov 0   ;;  %s1592_s0 = inlined_call_operand.vmem [shape: f32[2,4,256], index: 0, kind: input, shape index: {}]   ;;  %s1593_s1 = inlined_call_operand.vmem [shape: f32[9,256], index: 1, kind: input, shape index: {}]   ;;  %s1594_s2 = inlined_call_operand.vmem [shape: f32[9,8,4], index: 2, kind: input, shape index: {}]   ;;  %s1595_s3 = inlined_call_operand.vmem [shape: f32[8,1], index: 3, kind: input, shape index: {}]   ;;  %s1596_s4 = inlined_call_operand.vmem [shape: f32[3,8], index: 4, kind: input, shape index: {}]   ;;  %s1597_s5 = inlined_call_operand.vmem [shape: f32[3,1], index: 5, kind: input, shape index: {}]   ;;  %s1598_s6 = inlined_call_operand.vmem [shape: f32[2,3,256], index: 6, kind: output, shape index: {}]  }
   0x1 LB: > { %s1293_s22 = sadd.s32 4294967295, %s1363_s21   ;;  %p1297_p0 = scmp.ge.s32.totalorder %s1363_s21, 1  ;;  %s1363_s21 = sphi %s1410_s21, %s16_s21  }
   0x2   : > { %p212_p1 = scmp.lt.s32.totalorder %s1363_s21, 3 }
   0x4   : > { %p213_p2 = pnand %p1297_p0, %p212_p1 }
   0x5   : > { %p242_p3 = scmp.lt.s32.totalorder (!%p213_p2), %s1293_s22, 1  ;;  %s1365_s27 = smov (!%p213_p2), 17  }
   0x6   : > { %216 = sbr.rel (%p213_p2) target bundleno = 566 (0x236), region = 44  ;;  %s1366_s28 = smov (!%p213_p2), 16  }
   0x7   : > { %s1368_s29 = smov (!%p213_p2), 15   ;;  %s1369_s30 = smov (!%p213_p2), 1  }
   0x8   : > { %s1370_s7 = smov (!%p213_p2), 127   ;;  %s1371_s8 = smov (!%p213_p2), 113  }
   0x9   : > { %s1373_s9 = smov (!%p213_p2), 112   ;;  %s1374_s10 = smov (!%p213_p2), 111  }
   0xb   : > { %s1600_s22 = smov (!%p242_p3, %s1293_s22), 1  ;;  %v1367_v2 = vmov 0.0   ;;  %v1372_v3 = vmov 0   ;;  %v265_v4 = vld [vmem:[%s1595_s3] sm:$0xff]  ;;  %v276_v5 = vlaneseq  ;;  %v1466_v10 = vld [vmem:[%s1593_s1 + $0x8] sm:$0xff]  ;;  %vm312_vm1 = vcmask 1043456  }
   0xc   : > { %s1334_s23 = sshll.u32 %s1600_s22, 3  ;;  %383 = vmatprep.mubr.f32.mxu0 %v1367_v2  ;;  %463 = vmatprep.mubr.f32.mxu1 %v1367_v2  ;;  %v1461_v9 = vld [vmem:[%s1593_s1] sm:$0xff]  ;;  %vm308_vm5 = vcmask 31744   ;;  %v257_v40 = vld [vmem:[%s1594_s2 + $0x8] sm:$0xff]  ;;  %v258_v52 = vld [vmem:[%s1594_s2 + $0x10] sm:$0xff]  ;;  %vm1158_vm10 = vcmask 64512  }
   0xd   : > { %s246_s26 = scalar_lea.vmem %s1592_s0, %s1334_s23  ;;  %1354 = vset.pattern.permute.xlu0 %v1372_v3  ;;  %1355 = vset.pattern.permute.xlu1 %v1372_v3  ;;  %v1453_v6 = vshrl.u32 %v276_v5, 7  ;;  %v1455_v7 = vand.u32 127, %v276_v5  ;;  %v256_v26 = vld [vmem:[%s1594_s2] sm:$0xff]  ;;  %v259_v53 = vld [vmem:[%s1594_s2 + $0x18] sm:$0xff] }
   0xe   : > { %v1426_v0 = vld [vmem:[%s246_s26] sm:$0xff] }
   0xf   : > { %272 = vrot.lane.b32.xlu1 %v1426_v0, %s1365_s27  ;;  %291 = vrot.lane.b32.xlu0 %v1426_v0, %s1366_s28  ;;  %v1432_v1 = vcombine.high %v1426_v0, %v1426_v0  ;;  %v283_v8 = vsub.s32 0, %v1453_v6  ;;  %vm278_vm0 = vcmp.lt.s32.totalorder %v1455_v7, 17  ;;  %v300_v15 = vsub.s32 1, %v1453_v6  ;;  %v260_v63 = vld [vmem:[%s1594_s2 + $0x20] sm:$0xff] }
  0x10   : > { %v479_v18 = vsub.s32 2, %v1453_v6  ;;  %v578_v19 = vsub.s32 3, %v1453_v6  ;;  %vm474_vm2 = vcmp.lt.s32.totalorder %v1455_v7, 15  ;;  %vm295_vm3 = vcmp.lt.s32.totalorder %v1455_v7, 16 }
  0x11   : > { %v284_v13 = vrot.slane %v1461_v9, %v283_v8  ;;  %v288_v14 = vrot.slane %v1466_v10, %v283_v8  ;;  %v301_v24 = vrot.slane %v1461_v9, %v300_v15  ;;  %v305_v25 = vrot.slane %v1466_v10, %v300_v15 }
  0x12   : > { %vm573_vm4 = vcmp.lt.s32.totalorder %v1455_v7, 1  ;;  %v480_v27 = vrot.slane %v1461_v9, %v479_v18  ;;  %v484_v28 = vrot.slane %v1466_v10, %v479_v18  ;;  %v579_v31 = vrot.slane %v1461_v9, %v578_v19 }
  0x13   : > { %470 = vrot.lane.b32.xlu0 %v1426_v0, %s1368_s29  ;;  %274 = vrot.lane.b32.xlu1 %v1432_v1, %s1365_s27  ;;  %v757_v32 = vsub.s32 5, %v1453_v6  ;;  %v583_v39 = vrot.slane %v1466_v10, %v578_v19  ;;  %v856_v48 = vsub.s32 6, %v1453_v6  ;;  %vm752_vm6 = vcmp.lt.s32.totalorder %v1455_v7, 127  ;;  %v1327_v19 = vld [vmem:[%s1593_s1 + $0x18] ss:$0 sm:$0xff]  ;;  %s251_s27 = scalar_lea.vmem %s1598_s6, %s1334_s23 }
  0x14   : > { %v955_v59 = vsub.s32 7, %v1453_v6  ;;  %vm851_vm7 = vcmp.lt.s32.totalorder %v1455_v7, 113  ;;  %vm950_vm8 = vcmp.lt.s32.totalorder %v1455_v7, 112  ;;  %vm1049_vm9 = vcmp.lt.s32.totalorder %v1455_v7, 111 }
  0x15   : > { %v758_v44 = vrot.slane %v1461_v9, %v757_v32  ;;  %v762_v51 = vrot.slane %v1466_v10, %v757_v32  ;;  %v857_v58 = vrot.slane %v1461_v9, %v856_v48  ;;  %v861_v62 = vrot.slane %v1466_v10, %v856_v48 }
  0x17   : > { %472 = vrot.lane.b32.xlu1 %v1432_v1, %s1368_s29  ;;  %293 = vrot.lane.b32.xlu0 %v1432_v1, %s1366_s28 }
  0x1b   : > { %571 = vrot.lane.b32.xlu1 %v1432_v1, %s1369_s30  ;;  %569 = vrot.lane.b32.xlu0 %v1426_v0, %s1369_s30 }
  0x1f   : > { %750 = vrot.lane.b32.xlu1 %v1432_v1, %s1370_s7  ;;  %748 = vrot.lane.b32.xlu0 %v1426_v0, %s1370_s7 }
  0x23   : > { %849 = vrot.lane.b32.xlu1 %v1432_v1, %s1371_s8  ;;  %847 = vrot.lane.b32.xlu0 %v1426_v0, %s1371_s8 }
  0x27   : > { %948 = vrot.lane.b32.xlu1 %v1432_v1, %s1373_s9  ;;  %946 = vrot.lane.b32.xlu0 %v1426_v0, %s1373_s9 }
  0x2b   : > { %1047 = vrot.lane.b32.xlu1 %v1432_v1, %s1374_s10  ;;  %1045 = vrot.lane.b32.xlu0 %v1426_v0, %s1374_s10 }
  0x2f   : > { %1146 = vperm.xlu0 %1354, %v265_v4  }
  0x81   : > { %v273_v11 = vpop.permute.xlu1 %272  ;;  %v292_v12 = vpop.permute.xlu0 %291 }
  0x85   : > { %v471_v16 = vpop.permute.xlu0 %470  ;;  %v275_v17 = vpop.permute.xlu1 %274 }
  0x86   : > { %v279_v20 = vsel %vm278_vm0, %v273_v11, %v275_v17  ;;  %v280_v21 = vsel %vm278_vm0, %v275_v17, %v273_v11 }
  0x87   : > { %v289_v22 = vmul.f32 %v284_v13, %v280_v21  ;;  %v290_v23 = vmul.f32 %v288_v14, %v279_v20  ;;  %v262_v13 = vld [vmem:[%s1594_s2 + $0x30] sm:$0xff]  ;;  %v263_v20 = vld [vmem:[%s1594_s2 + $0x38] sm:$0xff] }
  0x89   : > { %1305 = vmatprep.subr.msk.mxu1 %vm312_vm1, %v290_v23  ;;  %v473_v29 = vpop.permute.xlu1 %472  ;;  %v294_v30 = vpop.permute.xlu0 %293 }
  0x8a   : > { %v475_v33 = vsel %vm474_vm2, %v471_v16, %v473_v29  ;;  %v296_v34 = vsel %vm295_vm3, %v292_v12, %v294_v30  ;;  %v297_v35 = vsel %vm295_vm3, %v294_v30, %v292_v12  ;;  %1306 = vmatpush1.msk.msra.mxu1 %vm312_vm1, %v289_v22  ;;  %v476_v36 = vsel %vm474_vm2, %v473_v29, %v471_v16 }
  0x8b   : > { %v306_v37 = vmul.f32 %v301_v24, %v297_v35  ;;  %v307_v38 = vmul.f32 %v305_v25, %v296_v34  ;;  %1307 = vmatmul.mubr.msk.f32.vlgmr.msra.gmra.mxu1 %vm308_vm5, %v256_v26  ;;  %v486_v41 = vmul.f32 %v484_v28, %v475_v33  ;;  %v485_v45 = vmul.f32 %v480_v27, %v476_v36  ;;  %v264_v26 = vld [vmem:[%s1594_s2 + $0x40] sm:$0xff] }
  0x8c   : > { %659 = vmatprep.mubr.f32.mxu1 %v1367_v2  ;;  %v960_v12 = vrot.slane %v1466_v10, %v955_v59  ;;  %v1326_v10 = vld [vmem:[%s1593_s1 + $0x10] ss:$0 sm:$0xff]  ;;  %v267_v27 = vld [vmem:[%s1597_s5] sm:$0x7] }
  0x8d   : > { %v572_v42 = vpop.permute.xlu1 %571  ;;  %1302 = vmatprep.subr.msk.mxu0 %vm312_vm1, %v307_v38  ;;  %v570_v43 = vpop.permute.xlu0 %569  ;;  %1155 = vperm.xlu1 %1355, %v267_v27  }
  0x8e   : > { %v574_v46 = vsel %vm573_vm4, %v570_v43, %v572_v42  ;;  %v575_v47 = vsel %vm573_vm4, %v572_v42, %v570_v43  ;;  %1303 = vmatpush1.msk.msra.mxu0 %vm312_vm1, %v306_v37 }
  0x8f   : > { %v584_v49 = vmul.f32 %v579_v31, %v575_v47  ;;  %v585_v50 = vmul.f32 %v583_v39, %v574_v46  ;;  %1304 = vmatmul.mubr.msk.f32.vlgmr.msra.gmra.mxu0 %vm308_vm5, %v257_v40  ;;  %1308 = vmatprep.subr.msk.mxu0 %vm312_vm1, %v486_v41 }
  0x90   : > { %1309 = vmatpush1.msk.msra.mxu0 %vm312_vm1, %v485_v45  ;;  %560 = vmatprep.mubr.f32.mxu0 %v1367_v2 }
  0x91   : > { %v751_v54 = vpop.permute.xlu1 %750  ;;  %1311 = vmatprep.subr.msk.mxu1 %vm312_vm1, %v585_v50  ;;  %v749_v55 = vpop.permute.xlu0 %748  ;;  %1314 = vmatprep.subr.msk.mxu0 %vm312_vm1, %v1432_v1  ;;  %v261_v1 = vld [vmem:[%s1594_s2 + $0x28] sm:$0xff] }
  0x92   : > { %v753_v56 = vsel %vm752_vm6, %v749_v55, %v751_v54  ;;  %v754_v57 = vsel %vm752_vm6, %v751_v54, %v749_v55  ;;  %1312 = vmatpush1.msk.msra.mxu1 %vm312_vm1, %v584_v49 }
  0x93   : > { %v763_v60 = vmul.f32 %v758_v44, %v753_v56  ;;  %v764_v61 = vmul.f32 %v762_v51, %v754_v57  ;;  %1310 = vmatmul.mubr.msk.f32.vlgmr.msra.gmra.mxu0 %vm308_vm5, %v258_v52  ;;  %1313 = vmatmul.mubr.msk.f32.vlgmr.msra.gmra.mxu1 %vm308_vm5, %v259_v53 }
  0x94   : > { %1315 = vmatpush1.msk.msra.mxu0 %vm312_vm1, %v1426_v0  ;;  %739 = vmatprep.mubr.f32.mxu0 %v1367_v2  ;;  %v956_v0 = vrot.slane %v1461_v9, %v955_v59 }
  0x95   : > { %v850_v3 = vpop.permute.xlu1 %849  ;;  %1317 = vmatprep.subr.msk.mxu1 %vm312_vm1, %v764_v61  ;;  %v848_v4 = vpop.permute.xlu0 %847  ;;  %838 = vmatprep.mubr.f32.mxu1 %v1367_v2 }
  0x96   : > { %v852_v5 = vsel %vm851_vm7, %v848_v4, %v850_v3  ;;  %v853_v6 = vsel %vm851_vm7, %v850_v3, %v848_v4  ;;  %1318 = vmatpush1.msk.msra.mxu1 %vm312_vm1, %v763_v60  ;;  %v266_v4 = vld [vmem:[%s1596_s4] sm:$0x7] }
  0x97   : > { %v862_v8 = vmul.f32 %v857_v58, %v852_v5  ;;  %v863_v11 = vmul.f32 %v861_v62, %v853_v6  ;;  %1316 = vmatmul.mubr.msk.f32.vlgmr.msra.gmra.mxu0 %vm308_vm5, %v260_v63  ;;  %1319 = vmatmul.mubr.msk.f32.vlgmr.msra.gmra.mxu1 %vm308_vm5, %v261_v1 }
  0x98   : > { %937 = vmatprep.mubr.f32.mxu0 %v1367_v2  ;;  %1036 = vmatprep.mubr.f32.mxu1 %v1367_v2 }
  0x99   : > { %v949_v14 = vpop.permute.xlu1 %948  ;;  %1320 = vmatprep.subr.msk.mxu0 %vm312_vm1, %v863_v11  ;;  %v947_v9 = vpop.permute.xlu0 %946 }
  0x9a   : > { %v951_v15 = vsel %vm950_vm8, %v947_v9, %v949_v14  ;;  %v952_v16 = vsel %vm950_vm8, %v949_v14, %v947_v9  ;;  %1321 = vmatpush1.msk.msra.mxu0 %vm312_vm1, %v862_v8 }
  0x9b   : > { %v961_v17 = vmul.f32 %v956_v0, %v951_v15  ;;  %v962_v18 = vmul.f32 %v960_v12, %v952_v16  ;;  %1322 = vmatmul.mubr.msk.f32.vlgmr.msra.gmra.mxu0 %vm308_vm5, %v262_v13 }
  0x9c   : > { %1135 = vmatprep.mubr.f32.mxu0 %v1367_v2 }
  0x9d   : > { %v1048_v21 = vpop.permute.xlu1 %1047  ;;  %1323 = vmatprep.subr.msk.mxu1 %vm312_vm1, %v962_v18  ;;  %v1046_v22 = vpop.permute.xlu0 %1045 }
  0x9e   : > { %v1050_v23 = vsel %vm1049_vm9, %v1046_v22, %v1048_v21  ;;  %v1051_v7 = vsel %vm1049_vm9, %v1048_v21, %v1046_v22  ;;  %1324 = vmatpush1.msk.msra.mxu1 %vm312_vm1, %v961_v17 }
  0x9f   : > { %v1060_v24 = vmul.f32 %v1326_v10, %v1050_v23  ;;  %v1061_v25 = vmul.f32 %v1327_v19, %v1051_v7  ;;  %1325 = vmatmul.mubr.msk.f32.vlgmr.msra.gmra.mxu1 %vm308_vm5, %v263_v20 }
  0xa0   : > { %1226 = vmatprep.mubr.f32.mxu1 %v1367_v2 }
  0xa1   : > { %1328 = vmatprep.subr.msk.mxu0 %vm312_vm1, %v1061_v25 }
  0xa2   : > { %1329 = vmatpush1.msk.msra.mxu0 %vm312_vm1, %v1060_v24 }
  0xa3   : > { %1330 = vmatmul.mubr.msk.f32.vlgmr.msra.gmra.mxu0 %vm308_vm5, %v264_v26 }
  0xaa   : > { %v1147_v59 = vpop.permute.xlu0 %1146 }
 0x108   : > { %v1156_v6 = vpop.permute.xlu1 %1155 }
 0x14b   : > { %v465_v28 = vpop.f32.mrf.mxu1 }
 0x14d   : > { %v467_v30 = vpop.f32.mrf.mxu1 }
 0x14f   : > { %v385_v29 = vpop.f32.mrf.mxu0 }
 0x150   : > { %v466_v31 = vadd.f32 %v465_v28, %v385_v29 }
 0x151   : > { %v387_v32 = vpop.f32.mrf.mxu0 }
 0x152   : > { %v468_v33 = vadd.f32 %v467_v30, %v387_v32 }
 0x153   : > { %v562_v34 = vpop.f32.mrf.mxu0  ;;  %v661_v35 = vpop.f32.mrf.mxu1 }
 0x154   : > { %v567_v2 = vadd.f32 %v562_v34, %v466_v31 }
 0x155   : > { %v564_v36 = vpop.f32.mrf.mxu0  ;;  %v663_v37 = vpop.f32.mrf.mxu1 }
 0x156   : > { %v568_v38 = vadd.f32 %v564_v36, %v468_v33  ;;  %v666_v39 = vadd.f32 %v661_v35, %v567_v2 }
 0x157   : > { %v741_v40 = vpop.f32.mrf.mxu0  ;;  %v840_v41 = vpop.f32.mrf.mxu1 }
 0x158   : > { %v667_v42 = vadd.f32 %v663_v37, %v568_v38  ;;  %v746_v43 = vadd.f32 %v741_v40, %v666_v39 }
 0x159   : > { %v743_v44 = vpop.f32.mrf.mxu0  ;;  %v842_v47 = vpop.f32.mrf.mxu1 }
 0x15a   : > { %v747_v45 = vadd.f32 %v743_v44, %v667_v42  ;;  %v845_v46 = vadd.f32 %v840_v41, %v746_v43 }
 0x15b   : > { %v939_v48 = vpop.f32.mrf.mxu0 }
 0x15c   : > { %v846_v49 = vadd.f32 %v842_v47, %v747_v45  ;;  %v944_v50 = vadd.f32 %v939_v48, %v845_v46 }
 0x15d   : > { %v941_v51 = vpop.f32.mrf.mxu0 }
 0x15e   : > { %v945_v54 = vadd.f32 %v941_v51, %v846_v49 }
 0x15f   : > { %v1038_v52 = vpop.f32.mrf.mxu1 }
 0x160   : > { %v1043_v55 = vadd.f32 %v1038_v52, %v944_v50 }
 0x161   : > { %v1040_v53 = vpop.f32.mrf.mxu1 }
 0x162   : > { %v1044_v57 = vadd.f32 %v1040_v53, %v945_v54 }
 0x163   : > { %v1137_v56 = vpop.f32.mrf.mxu0 }
 0x164   : > { %v1142_v58 = vadd.f32 %v1137_v56, %v1043_v55 }
 0x165   : > { %v1139_v60 = vpop.f32.mrf.mxu0 }
 0x166   : > { %v1143_v61 = vadd.f32 %v1139_v60, %v1044_v57  ;;  %v1149_v62 = vadd.f32 %v1147_v59, %v1142_v58 }
 0x168   : > { %v1150_v63 = vadd.f32 %v1147_v59, %v1143_v61  ;;  %v1151_v3 = vmax.f32 %v1149_v62, 0.0 }
 0x16a   : > { %v1152_v1 = vmax.f32 %v1150_v63, 0.0 }
 0x16c   : > { %1192 = vmatprep.subr.mxu1 %v1152_v1 }
 0x16d   : > { %1193 = vmatpush1.msra.mxu1 %v1151_v3 }
 0x16e   : > { %1331 = vmatmul.mubr.msk.f32.vlgmr.msra.gmra.mxu1 %vm1158_vm10, %v266_v4 }
 0x22e   : > { %v1228_v5 = vpop.f32.mrf.mxu1 }
 0x22f   : > { %v1229_v8 = vadd.f32 %v1228_v5, %v1156_v6 }
 0x230   : > { %v1230_v0 = vpop.f32.mrf.mxu1 }
 0x231   : > { %v1231_v11 = vadd.f32 %v1230_v0, %v1156_v6 }
 0x233   : > { %v1235_v12 = vcombine.low %v1229_v8, %v1231_v11 }
 0x235   : > { %1237 = vst [vmem:[%s251_s27] sm:$0x77] %v1235_v12 }
 0x236 PF: > { %s16_s21 = sadd.s32 1, %s1363_s21  }
 0x237   : > { %p13_p4 = scmp.ge.s32.totalorder %s16_s21, 4  }
 0x239   :  { %15 = sbr.rel (!%p13_p4) target bundleno = 1 (0x1), region = 74 }

</bundles_post_ra>
